<compile_context>
chip_gen: v7x
topology: tpu7x:2x2x1
jax: 0.10.0
libtpu: 0.0.40
codegen_flags: <defaults>
</compile_context>

<pallas_src>
import functools

import jax
import jax.numpy as jnp
import numpy as np
from jax.experimental import pallas as pl
from jax.experimental.pallas import tpu as pltpu


def _round_up(x, m):
    return (x + m - 1) // m * m


def _kron_embed_tile_kernel(ii_ref, jj_ref, a_ref, b_ref, o_ref):
    """One token tile.

    ii_ref: (TQ, 1) int32   row ids into the A factor (idx // m2)
    jj_ref: (TQ, 1) int32   row ids into the B factor (idx %  m2)
    a_ref : (r, m1, E)      expanded A factor, whole-resident in VMEM
    b_ref : (r, m2, E)      expanded B factor, whole-resident in VMEM
    o_ref : (TQ, E)         output slab, E = n1 * n2
    """
    tq = ii_ref.shape[0]
    r, m1, e = a_ref.shape
    m2 = b_ref.shape[1]
    cdt = a_ref.dtype

    ii = ii_ref[...]                                     # (TQ, 1)
    jj = jj_ref[...]                                     # (TQ, 1)
    oh_i = (ii == jax.lax.broadcasted_iota(jnp.int32, (tq, m1), 1)).astype(cdt)
    oh_j = (jj == jax.lax.broadcasted_iota(jnp.int32, (tq, m2), 1)).astype(cdt)

    acc = jnp.zeros((tq, e), jnp.float32)
    for s in range(r):  # r is small & static -> unrolled
        rows_a = jnp.dot(oh_i, a_ref[s], preferred_element_type=jnp.float32)
        rows_b = jnp.dot(oh_j, b_ref[s], preferred_element_type=jnp.float32)
        acc = acc + rows_a * rows_b
    o_ref[...] = acc.astype(o_ref.dtype)


@functools.partial(jax.jit, static_argnames=("block_tokens",))
def kron_embedding_lookup(x, A, B, *, block_tokens=256):
    """weight[x] without materializing weight. x: int array, out: x.shape + (n1*n2,)."""
    r, m1, n1 = A.shape
    _, m2, n2 = B.shape
    E = n1 * n2

    idx = x.reshape(-1).astype(jnp.int32)
    num_tokens = idx.shape[0]

    tq = min(block_tokens, _round_up(num_tokens, 8))
    t_pad = _round_up(num_tokens, tq)
    if t_pad != num_tokens:
        idx = jnp.pad(idx, (0, t_pad - num_tokens))      # pad with index 0 (valid row)

    # Factor-row ids: one div/mod pass in XLA instead of per-grid-step scalar ops.
    ii = (idx // m2).reshape(t_pad, 1)
    jj = (idx % m2).reshape(t_pad, 1)

    # Pre-expanded factors so the per-token rank-r combine is lane-aligned:
    #   A_exp[s, i, a*n2 + b] = A[s, i, a],  B_exp[s, j, a*n2 + b] = B[s, j, b]
    A_exp = jnp.repeat(A, n2, axis=2)                    # (r, m1, E)
    B_exp = jnp.tile(B, (1, 1, n1))                      # (r, m2, E)

    # TODO(synk): for v5e/v6e/v7x production, cast A_exp/B_exp and the in-kernel
    # one-hots to bf16 (keep f32 accumulation) for ~2x MXU throughput; kept in
    # the param dtype here so the f32 correctness check is exact.

    out = pl.pallas_call(
        _kron_embed_tile_kernel,
        out_shape=jax.ShapeDtypeStruct((t_pad, E), A.dtype),
        grid=(t_pad // tq,),
        in_specs=[
            pl.BlockSpec((tq, 1), lambda t: (t, 0)),
            pl.BlockSpec((tq, 1), lambda t: (t, 0)),
            pl.BlockSpec((r, m1, E), lambda t: (0, 0, 0)),   # whole-resident factor
            pl.BlockSpec((r, m2, E), lambda t: (0, 0, 0)),   # whole-resident factor
        ],
        out_specs=pl.BlockSpec((tq, E), lambda t: (t, 0)),
        compiler_params=pltpu.CompilerParams(
            dimension_semantics=("parallel",),
        ),
    )(ii, jj, A_exp, B_exp)

    return out[:num_tokens].reshape(x.shape + (E,))


def kron_opt_learned_positional_embedding_forward(
    attention_mask, A, B, *, past_key_values_length=0, position_ids=None,
    offset=2, block_tokens=256):
    """Matches KronOPTLearnedPositionalEmbedding.forward (offset = 2)."""
    if position_ids is None:
        mask = attention_mask.astype(jnp.int32)
        position_ids = jnp.cumsum(mask, axis=1) * mask - 1
        position_ids = position_ids[:, past_key_values_length:]
    return kron_embedding_lookup(position_ids + offset, A, B,
                                 block_tokens=block_tokens)


def _reference_forward(attention_mask, A, B, past_key_values_length=0, offset=2):
    mask = attention_mask.astype(jnp.int32)
    pos = jnp.cumsum(mask, axis=1) * mask - 1
    pos = pos[:, past_key_values_length:]
    r, m1, n1 = A.shape
    _, m2, n2 = B.shape
    weight = jnp.einsum("sia,sjb->ijab", A, B).reshape(m1 * m2, n1 * n2)
    return weight[pos + offset]


if __name__ == "__main__":
    # Small shapes consistent with the module: vocab = m1*m2 = 32 positions,
    # embedding dim = n1*n2 = 32, batch = 2, seq = 8, offset = 2.
    r, m1, n1, m2, n2 = 2, 4, 4, 8, 8
    batch, seq = 2, 8

    key = jax.random.PRNGKey(0)
    kA, kB, km = jax.random.split(key, 3)

    A = jax.random.normal(kA, (r, m1, n1), dtype=jnp.float32)
    B = jax.random.normal(kB, (r, m2, n2), dtype=jnp.float32)
    # attention mask with some padded (zero) positions
    attention_mask = (jax.random.uniform(km, (batch, seq)) > 0.3).astype(jnp.int32)

    out = kron_opt_learned_positional_embedding_forward(attention_mask, A, B)
    out = jax.block_until_ready(out)
    ref = _reference_forward(attention_mask, A, B)
    np.testing.assert_allclose(np.asarray(out), np.asarray(ref), rtol=1e-5, atol=1e-5)
    assert out.shape == (batch, seq, n1 * n2)

    # also exercise the past_key_values_length path
    out2 = kron_opt_learned_positional_embedding_forward(
        attention_mask, A, B, past_key_values_length=2)
    out2 = jax.block_until_ready(out2)
    ref2 = _reference_forward(attention_mask, A, B, past_key_values_length=2)
    np.testing.assert_allclose(np.asarray(out2), np.asarray(ref2), rtol=1e-5, atol=1e-5)
    assert out2.shape == (batch, seq - 2, n1 * n2)

    print("KERNEL_OK")
</pallas_src>

<mosaic_0001>
module attributes {stable_mosaic.version = 11 : i64} {
  func.func @_kron_embed_tile_kernel(%arg0: i32, %arg1: memref<16x1xi32, #tpu.memory_space<vmem>>, %arg2: memref<16x1xi32, #tpu.memory_space<vmem>>, %arg3: memref<2x4x32xf32, #tpu.memory_space<vmem>>, %arg4: memref<2x8x32xf32, #tpu.memory_space<vmem>>, %arg5: memref<16x32xf32, #tpu.memory_space<vmem>>) attributes {dimension_semantics = [#tpu.dimension_semantics<parallel>], iteration_bounds = array<i64: 1>, scalar_prefetch = 0 : i64, scratch_operands = 0 : i64, tpu.core_type = #tpu.core_type<tc>, window_params = [{transform_indices = @transform_0, window_bounds = array<i64: 16, 1>}, {transform_indices = @transform_1, window_bounds = array<i64: 16, 1>}, {pipeline_mode = #tpu.pipeline_mode<synchronous>, transform_indices = @transform_2, window_bounds = array<i64: 2, 4, 32>}, {pipeline_mode = #tpu.pipeline_mode<synchronous>, transform_indices = @transform_3, window_bounds = array<i64: 2, 8, 32>}, {transform_indices = @transform_4, window_bounds = array<i64: 16, 32>}]} {
    %c0 = arith.constant 0 : index
    %c0_0 = arith.constant 0 : index
    %0 = vector.load %arg1[%c0, %c0_0] : memref<16x1xi32, #tpu.memory_space<vmem>>, vector<16x1xi32>
    %c0_1 = arith.constant 0 : index
    %c0_2 = arith.constant 0 : index
    %1 = vector.load %arg2[%c0_1, %c0_2] : memref<16x1xi32, #tpu.memory_space<vmem>>, vector<16x1xi32>
    %2 = tpu.iota {dimensions = array<i32: 1>} : vector<16x4xi32>
    %3 = vector.broadcast %0 : vector<16x1xi32> to vector<16x4xi32>
    %4 = arith.cmpi eq, %3, %2 : vector<16x4xi32>
    %5 = arith.extui %4 : vector<16x4xi1> to vector<16x4xi32>
    %6 = arith.sitofp %5 : vector<16x4xi32> to vector<16x4xf32>
    %7 = tpu.iota {dimensions = array<i32: 1>} : vector<16x8xi32>
    %8 = vector.broadcast %1 : vector<16x1xi32> to vector<16x8xi32>
    %9 = arith.cmpi eq, %8, %7 : vector<16x8xi32>
    %10 = arith.extui %9 : vector<16x8xi1> to vector<16x8xi32>
    %11 = arith.sitofp %10 : vector<16x8xi32> to vector<16x8xf32>
    %cst = arith.constant 0.000000e+00 : f32
    %12 = vector.broadcast %cst : f32 to vector<16x32xf32>
    %c0_3 = arith.constant 0 : index
    %c0_4 = arith.constant 0 : index
    %c0_5 = arith.constant 0 : index
    %13 = vector.load %arg3[%c0_3, %c0_4, %c0_5] : memref<2x4x32xf32, #tpu.memory_space<vmem>>, vector<1x4x32xf32>
    %14 = vector.shape_cast %13 : vector<1x4x32xf32> to vector<4x32xf32>
    %cst_6 = arith.constant dense<0.000000e+00> : vector<16x32xf32>
    %15 = tpu.matmul %6, %14, %cst_6 {dimension_numbers = #tpu.dot_dimension_numbers<[1], [0], [0], [1], [0, 0, 1, 1], [], []>} : vector<16x4xf32>, vector<4x32xf32>, vector<16x32xf32> -> vector<16x32xf32>
    %c0_7 = arith.constant 0 : index
    %c0_8 = arith.constant 0 : index
    %c0_9 = arith.constant 0 : index
    %16 = vector.load %arg4[%c0_7, %c0_8, %c0_9] : memref<2x8x32xf32, #tpu.memory_space<vmem>>, vector<1x8x32xf32>
    %17 = vector.shape_cast %16 : vector<1x8x32xf32> to vector<8x32xf32>
    %cst_10 = arith.constant dense<0.000000e+00> : vector<16x32xf32>
    %18 = tpu.matmul %11, %17, %cst_10 {dimension_numbers = #tpu.dot_dimension_numbers<[1], [0], [0], [1], [0, 0, 1, 1], [], []>} : vector<16x8xf32>, vector<8x32xf32>, vector<16x32xf32> -> vector<16x32xf32>
    %19 = arith.mulf %15, %18 : vector<16x32xf32>
    %20 = arith.addf %12, %19 : vector<16x32xf32>
    %c1 = arith.constant 1 : index
    %c0_11 = arith.constant 0 : index
    %c0_12 = arith.constant 0 : index
    %21 = vector.load %arg3[%c1, %c0_11, %c0_12] : memref<2x4x32xf32, #tpu.memory_space<vmem>>, vector<1x4x32xf32>
    %22 = vector.shape_cast %21 : vector<1x4x32xf32> to vector<4x32xf32>
    %cst_13 = arith.constant dense<0.000000e+00> : vector<16x32xf32>
    %23 = tpu.matmul %6, %22, %cst_13 {dimension_numbers = #tpu.dot_dimension_numbers<[1], [0], [0], [1], [0, 0, 1, 1], [], []>} : vector<16x4xf32>, vector<4x32xf32>, vector<16x32xf32> -> vector<16x32xf32>
    %c1_14 = arith.constant 1 : index
    %c0_15 = arith.constant 0 : index
    %c0_16 = arith.constant 0 : index
    %24 = vector.load %arg4[%c1_14, %c0_15, %c0_16] : memref<2x8x32xf32, #tpu.memory_space<vmem>>, vector<1x8x32xf32>
    %25 = vector.shape_cast %24 : vector<1x8x32xf32> to vector<8x32xf32>
    %cst_17 = arith.constant dense<0.000000e+00> : vector<16x32xf32>
    %26 = tpu.matmul %11, %25, %cst_17 {dimension_numbers = #tpu.dot_dimension_numbers<[1], [0], [0], [1], [0, 0, 1, 1], [], []>} : vector<16x8xf32>, vector<8x32xf32>, vector<16x32xf32> -> vector<16x32xf32>
    %27 = arith.mulf %23, %26 : vector<16x32xf32>
    %28 = arith.addf %20, %27 : vector<16x32xf32>
    %c0_18 = arith.constant 0 : index
    %c0_19 = arith.constant 0 : index
    %29 = vector.load %arg5[%c0_18, %c0_19] : memref<16x32xf32, #tpu.memory_space<vmem>>, vector<16x32xf32>
    tpu.vector_store %arg5[%c0_18, %c0_19], %28 {strides = array<i32>} : memref<16x32xf32, #tpu.memory_space<vmem>>, vector<16x32xf32>,
    return
  }
  func.func @transform_0(%arg0: i32) -> (i32, i32) {
    %c0_i32 = arith.constant 0 : i32
    %c0_i32_0 = arith.constant 0 : i32
    return %arg0, %c0_i32 : i32, i32
  }
  func.func @transform_1(%arg0: i32) -> (i32, i32) {
    %c0_i32 = arith.constant 0 : i32
    %c0_i32_0 = arith.constant 0 : i32
    return %arg0, %c0_i32 : i32, i32
  }
  func.func @transform_2(%arg0: i32) -> (i32, i32, i32) {
    %c0_i32 = arith.constant 0 : i32
    %c0_i32_0 = arith.constant 0 : i32
    %c0_i32_1 = arith.constant 0 : i32
    %c0_i32_2 = arith.constant 0 : i32
    return %c0_i32, %c0_i32_0, %c0_i32_1 : i32, i32, i32
  }
  func.func @transform_3(%arg0: i32) -> (i32, i32, i32) {
    %c0_i32 = arith.constant 0 : i32
    %c0_i32_0 = arith.constant 0 : i32
    %c0_i32_1 = arith.constant 0 : i32
    %c0_i32_2 = arith.constant 0 : i32
    return %c0_i32, %c0_i32_0, %c0_i32_1 : i32, i32, i32
  }
  func.func @transform_4(%arg0: i32) -> (i32, i32) {
    %c0_i32 = arith.constant 0 : i32
    %c0_i32_0 = arith.constant 0 : i32
    return %arg0, %c0_i32 : i32, i32
  }
}

</mosaic_0001>

<bundles_post_ra>
// kernel: tile.9
= control target key start
LH: loop header
LB: loop body
LE: loop exit
PB: predicated region body
PF: predicated region fallthrough
CT: control target
= control target key end

     0   :  { %vm82_vm0 = vcmask 1047556   ;;  %vm84_vm1 = vcmask 64512   ;;  %s195_s9 = smov 24   ;;  %s196_s14 = smov 8   ;;  %vm103_vm2 = vcmask 261312   ;;  %vm124_vm3 = vcmask 195712   ;;  %s289_s0 = inlined_call_operand.vmem [shape: f32[2,8,4,8], index: 0, kind: input, shape index: {}]   ;;  %s290_s1 = inlined_call_operand.vmem [shape: f32[2,8,32], index: 1, kind: output, shape index: {}]  }
   0x1   :  { %v180_v0 = vld [vmem:[%s289_s0 + $0x1c] sm:$0xf]  ;;  %v181_v1 = vld [vmem:[%s289_s0 + $0x18] sm:$0xf]  ;;  %v182_v2 = vld [vmem:[%s289_s0 + $0x14] sm:$0xf] }
   0x2   :  { %48 = vst [vmem:[#allocation0 + $0x38] sm:$0xf] %v180_v0  ;;  %53 = vst [vmem:[#allocation0 + $0x30] sm:$0xf] %v181_v1  ;;  %v183_v3 = vld [vmem:[%s289_s0 + $0x10] sm:$0xf] }
   0x3   :  { %58 = vst [vmem:[#allocation0 + $0x28] sm:$0xf] %v182_v2  ;;  %v184_v4 = vld [vmem:[%s289_s0 + $0xc] sm:$0xf]  ;;  %v185_v5 = vld [vmem:[%s289_s0 + $0x8] sm:$0xf] }
   0x4   :  { %63 = vst [vmem:[#allocation0 + $0x20] sm:$0xf] %v183_v3  ;;  %68 = vst [vmem:[#allocation0 + $0x18] sm:$0xf] %v184_v4  ;;  %v186_v6 = vld [vmem:[%s289_s0 + $0x4] sm:$0xf] }
   0x5   :  { %73 = vst [vmem:[#allocation0 + $0x10] sm:$0xf] %v185_v5  ;;  %v78_v7 = vld [vmem:[%s289_s0] sm:$0xf]  ;;  %77 = vst [vmem:[#allocation0 + $0x8] sm:$0xf] %v186_v6 }
   0x6   :  { %79 = vst [vmem:[#allocation0] sm:$0xf] %v78_v7  ;;  %v172_v8 = vld [vmem:[%s289_s0 + $0x3c] sm:$0xf]  ;;  %v173_v9 = vld [vmem:[%s289_s0 + $0x38] sm:$0xf] }
   0x7   :  { %8 = vst [vmem:[#allocation0 + $0x78] sm:$0xf] %v172_v8  ;;  %13 = vst [vmem:[#allocation0 + $0x70] sm:$0xf] %v173_v9  ;;  %v174_v10 = vld [vmem:[%s289_s0 + $0x34] sm:$0xf] }
   0x8   :  { %v175_v11 = vld [vmem:[%s289_s0 + $0x30] sm:$0xf]  ;;  %v176_v12 = vld [vmem:[%s289_s0 + $0x2c] sm:$0xf]  ;;  %18 = vst [vmem:[#allocation0 + $0x68] sm:$0xf] %v174_v10 }
   0x9   :  { %23 = vst [vmem:[#allocation0 + $0x60] sm:$0xf] %v175_v11  ;;  %28 = vst [vmem:[#allocation0 + $0x58] sm:$0xf] %v176_v12  ;;  %v177_v13 = vld [vmem:[%s289_s0 + $0x28] sm:$0xf] }
   0xa   :  { %v178_v14 = vld [vmem:[%s289_s0 + $0x24] sm:$0xf]  ;;  %v179_v15 = vld [vmem:[%s289_s0 + $0x20] sm:$0xf]  ;;  %33 = vst [vmem:[#allocation0 + $0x50] sm:$0xf] %v177_v13 }
   0xb   :  { %38 = vst [vmem:[#allocation0 + $0x48] sm:$0xf] %v178_v14  ;;  %43 = vst [vmem:[#allocation0 + $0x40] sm:$0xf] %v179_v15  ;;  %s194_s0 = smov 16   ;;  %vm145_vm4 = vcmask 130112  }
   0xc   :  { %v119_v16 = vld [vmem:[#allocation0 + $0x2] ss:$8 sm:$0xf0]   ;;  %v98_v17 = vld [vmem:[#allocation0 + $0x3] ss:$8 sm:$0xf0]  }
   0xd   :  { %v117_v18 = vld [vmem:[#allocation0 + $0x2] ss:$8 sm:$0xf]   ;;  %v96_v19 = vld [vmem:[#allocation0 + $0x3] ss:$8 sm:$0xf]  }
   0xe   :  { %v121_v20 = vsel %vm82_vm0, %v119_v16, %v117_v18  ;;  %v100_v21 = vsel %vm82_vm0, %v98_v17, %v96_v19  ;;  %v138_v24 = vld [vmem:[#allocation0 + $0x1] ss:$8 sm:$0xf]   ;;  %v80_v32 = vld [vmem:[#allocation0] ss:$8 sm:$0xf]  }
   0xf   :  { %122 = vrot.lane.b32.xlu1 %v121_v20, %s194_s0  ;;  %101 = vrot.lane.b32.xlu0 %v100_v21, %s195_s9  ;;  %v140_v25 = vld [vmem:[#allocation0 + $0x1] ss:$8 sm:$0xf0]   ;;  %v81_v33 = vld [vmem:[#allocation0] ss:$8 sm:$0xf0]  }
  0x10   :  { %v129_v22 = vld [vmem:[#allocation0 + $0x42] ss:$8 sm:$0xf0]   ;;  %v108_v23 = vld [vmem:[#allocation0 + $0x43] ss:$8 sm:$0xf0]   ;;  %v83_v34 = vsel %vm82_vm0, %v81_v33, %v80_v32  ;;  %v142_v38 = vsel %vm82_vm0, %v140_v25, %v138_v24 }
  0x11   :  { %v150_v31 = vld [vmem:[#allocation0 + $0x41] ss:$8 sm:$0xf0]   ;;  %v89_v36 = vld [vmem:[#allocation0 + $0x40] ss:$8 sm:$0xf0]  }
  0x12   :  { %v127_v26 = vld [vmem:[#allocation0 + $0x42] ss:$8 sm:$0xf]   ;;  %v106_v27 = vld [vmem:[#allocation0 + $0x43] ss:$8 sm:$0xf]  }
  0x13   :  { %v131_v28 = vsel %vm82_vm0, %v129_v22, %v127_v26  ;;  %v110_v29 = vsel %vm82_vm0, %v108_v23, %v106_v27  ;;  %v148_v30 = vld [vmem:[#allocation0 + $0x41] ss:$8 sm:$0xf]   ;;  %v87_v35 = vld [vmem:[#allocation0 + $0x40] ss:$8 sm:$0xf]  }
  0x14   :  { %132 = vrot.lane.b32.xlu1 %v131_v28, %s194_s0  ;;  %111 = vrot.lane.b32.xlu0 %v110_v29, %s195_s9  ;;  %v152_v37 = vsel %vm82_vm0, %v150_v31, %v148_v30  ;;  %85 = vst.msk [vmem:[%s290_s1] sm:$0xff] %vm84_vm1, %v83_v34   ;;  %v91_v39 = vsel %vm82_vm0, %v89_v36, %v87_v35 }
  0x15   :  { %187 = vst.msk [vmem:[%s290_s1 + $0x8] sm:$0xff] %vm84_vm1, %v91_v39  }
  0x18   :  { %153 = vrot.lane.b32.xlu1 %v152_v37, %s196_s14  ;;  %143 = vrot.lane.b32.xlu0 %v142_v38, %s196_s14 }
  0x81   :  { %v123_v40 = vpop.permute.xlu1 %122   ;;  %v102_v41 = vpop.permute.xlu0 %101  }
  0x82   :  { %104 = vst.msk [vmem:[%s290_s1] sm:$0xff] %vm103_vm2, %v102_v41  }
  0x83   :  { %125 = vst.msk [vmem:[%s290_s1] sm:$0xff] %vm124_vm3, %v123_v40  }
  0x86   :  { %v133_v42 = vpop.permute.xlu1 %132   ;;  %v112_v43 = vpop.permute.xlu0 %111  }
  0x87   :  { %188 = vst.msk [vmem:[%s290_s1 + $0x8] sm:$0xff] %vm103_vm2, %v112_v43  }
  0x88   :  { %189 = vst.msk [vmem:[%s290_s1 + $0x8] sm:$0xff] %vm124_vm3, %v133_v42  }
  0x8a   :  { %v154_v44 = vpop.permute.xlu1 %153   ;;  %v144_v45 = vpop.permute.xlu0 %143  }
  0x8b   :  { %190 = vst.msk [vmem:[%s290_s1 + $0x8] sm:$0xff] %vm145_vm4, %v154_v44   ;;  %146 = vst.msk [vmem:[%s290_s1] sm:$0xff] %vm145_vm4, %v144_v45  }

// kernel: kron_embedding_lookup.1
= control target key start
LH: loop header
LB: loop body
LE: loop exit
PB: predicated region body
PF: predicated region fallthrough
CT: control target
= control target key end

     0   :  { %v481_v2 = vmov 0   ;;  %s555_s0 = inlined_call_operand.vmem [shape: s32[16,1], index: 0, kind: input, shape index: {}]   ;;  %s556_s1 = inlined_call_operand.vmem [shape: s32[16,1], index: 1, kind: input, shape index: {}]   ;;  %s557_s2 = inlined_call_operand.vmem [shape: f32[2,4,32], index: 2, kind: input, shape index: {}]   ;;  %s558_s3 = inlined_call_operand.vmem [shape: f32[2,8,32], index: 3, kind: input, shape index: {}]   ;;  %s559_s4 = inlined_call_operand.hbm [shape: f32[16,32], index: 4, kind: output, shape index: {}]  }
   0x1   :  { %v19_v0 = vld [vmem:[%s555_s0 + $0x8] sm:$0xff]  ;;  %v18_v1 = vld [vmem:[%s555_s0] sm:$0xff]  ;;  %456 = vset.pattern.permute.xlu1 %v481_v2  ;;  %455 = vset.pattern.permute.xlu0 %v481_v2 }
   0x2   :  { %9 = vsyncpa [#allocation3], 0  ;;  %28 = vperm.xlu1 %456, %v19_v0   ;;  %25 = vperm.xlu0 %455, %v18_v1   ;;  %v48_v3 = vld [vmem:[%s557_s2] sm:$0xf]  ;;  %vm56_vm0 = vcmask 1043456   ;;  %v21_v4 = vld [vmem:[%s556_s1 + $0x8] sm:$0xff]  ;;  %v22_v9 = vlaneseq }
   0x3   :  { %v20_v5 = vld [vmem:[%s556_s1] sm:$0xff]  ;;  %430 = vmatprep.subr.msk.mxu0 %vm56_vm0, %v48_v3  ;;  %v415_v8 = vld [vmem:[%s558_s3 + $0x8] sm:$0xff]  ;;  %vm49_vm1 = vcmask 31744   ;;  %v482_v13 = vmov 0.0   ;;  %vm136_vm4 = vcmask 64512   ;;  %vm383_vm7 = vcmask 261120  }
   0x4   :  { %431 = vmatpush3.msk.msra.mxu0 %vm56_vm0, %v48_v3  ;;  %v135_v6 = vld [vmem:[%s558_s3] sm:$0xff]  ;;  %v23_v10 = vand.u32 127, %v22_v9 }
   0x5   :  { %v411_v7 = vld [vmem:[%s557_s2 + $0x4] sm:$0xf]  ;;  %435 = vmatprep.subr.mxu1 %v135_v6  ;;  %s483_s2 = smov [#allocation2]  }
   0x6   :  { %40 = vperm.xlu1 %456, %v21_v4   ;;  %37 = vperm.xlu0 %455, %v20_v5   ;;  %s391_s3 = sshll.u32 %s483_s2, 4  ;;  %s392_s3 = int_to_ptr.vmem [resolvable:$true] %s391_s3 }
   0x7   :  { %440 = vmatprep.subr.msk.mxu0 %vm56_vm0, %v411_v7  ;;  %436 = vmatpush3.msra.mxu1 %v135_v6  ;;  %s457_s29 = scalar_lea.vmem %s392_s3, 256  ;;  %p462_p1 = scmp.lt.s32.totalorder %s392_s3, %s392_s3 }
   0x8   :  { %445 = vmatprep.subr.mxu1 %v415_v8  ;;  %p458_p0 = scmp.ne.s32.totalorder %s392_s3, %s457_s29  ;;  %p463_p2 = scmp.lt.s32.totalorder %s457_s29, %s457_s29 }
   0xa   :  { %p464_p3 = por %p463_p2, %p462_p1 }
   0xc   :  { %p465_p4 = pnand %p464_p3, %p458_p0 }
  0x81   :  { %v29_v11 = vpop.permute.xlu1 %28  ;;  %v26_v12 = vpop.permute.xlu0 %25 }
  0x82   :  { %vm31_vm2 = vcmp.eq.s32.totalorder %v29_v11, %v23_v10  ;;  %vm30_vm3 = vcmp.eq.s32.totalorder %v26_v12, %v23_v10 }
  0x83   :  { %v403_v14 = vsel %vm31_vm2, 1.0, %v482_v13  ;;  %v402_v15 = vsel %vm30_vm3, 1.0, %v482_v13 }
  0x84   :  { %432 = vmatprep.mubr.msk.f32.mxu0 %vm49_vm1, %v402_v15 }
  0x85   :  { %v41_v16 = vpop.permute.xlu1 %40  ;;  %433 = vmatmul.mubr.msk.f32.vlgmr.msra.gmra.mrb[0].mxu0 %vm49_vm1, %v403_v14  ;;  %v38_v17 = vpop.permute.xlu0 %37 }
  0x86   :  { %vm43_vm5 = vcmp.eq.s32.totalorder %v41_v16, %v23_v10  ;;  %vm42_vm6 = vcmp.eq.s32.totalorder %v38_v17, %v23_v10  ;;  %442 = vmatprep.mubr.msk.f32.mxu0 %vm49_vm1, %v402_v15  ;;  %441 = vmatpush3.msk.msra.mxu0 %vm56_vm0, %v411_v7 }
  0x87   :  { %v405_v18 = vsel %vm43_vm5, 1.0, %v482_v13  ;;  %v404_v19 = vsel %vm42_vm6, 1.0, %v482_v13 }
  0x88   :  { %437 = vmatprep.mubr.msk.f32.mxu1 %vm136_vm4, %v404_v19 }
  0x89   :  { %438 = vmatmul.mubr.msk.f32.vlgmr.msra.gmra.mrb[0].mxu1 %vm136_vm4, %v405_v18  ;;  %443 = vmatmul.mubr.msk.f32.vlgmr.msra.gmra.mrb[2].mxu0 %vm49_vm1, %v403_v14 }
  0x8a   :  { %446 = vmatpush3.msra.mxu1 %v415_v8  ;;  %447 = vmatprep.mubr.msk.f32.mxu1 %vm136_vm4, %v404_v19 }
  0x8d   :  { %448 = vmatmul.mubr.msk.f32.vlgmr.msra.gmra.mrb[2].mxu1 %vm136_vm4, %v405_v18 }
 0x158   :  { %v434_v20 = vpop.f32.mrb[0].mxu0 }
 0x159   :  { %v126_v21 = vpop.f32.mrb[1].mxu0 }
 0x15c   :  { %v439_v22 = vpop.f32.mrb[0].mxu1  ;;  %v444_v23 = vpop.f32.mrb[2].mxu0 }
 0x15d   :  { %v219_v24 = vmul.f32 %v439_v22, %v434_v20  ;;  %v209_v25 = vpop.f32.mrb[1].mxu1  ;;  %v293_v26 = vpop.f32.mrb[3].mxu0 }
 0x15e   :  { %v218_v27 = vmul.f32 %v209_v25, %v126_v21 }
 0x160   :  { %v449_v28 = vpop.f32.mrb[2].mxu1 }
 0x161   :  { %v380_v29 = vmul.f32 %v449_v28, %v444_v23  ;;  %v370_v30 = vpop.f32.mrb[3].mxu1 }
 0x162   :  { %v379_v31 = vmul.f32 %v370_v30, %v293_v26 }
 0x163   :  { %v382_v32 = vadd.f32 %v380_v29, %v219_v24 }
 0x164   :  { %v381_v33 = vadd.f32 %v379_v31, %v218_v27 }
 0x165   :  { %385 = vst.msk [vmem:[#allocation2 + $0x8] sm:$0xff] %vm383_vm7, %v382_v32 }
 0x166   :  { %384 = vst.msk [vmem:[#allocation2] sm:$0xff] %vm383_vm7, %v381_v33 }
 0x167   :  { %468 = shalt.err (!%p465_p4)
}
 0x168   :  { %s469_s6 = scalar_lea.hbm %s559_s4, 256 }
 0x169   :  { %p470_p5 = scmp.ne.s32.totalorder %s559_s4, %s469_s6  ;;  %p473_p6 = scmp.lt.u32.totalorder %s469_s6, %s559_s4 }
 0x16b   :  { %p475_p7 = pnand %p473_p6, %p470_p5 }
 0x16d   :  { %478 = shalt.err (!%p475_p7)
}
 0x16e   :  { %s484_s11 = smov 128   ;;  %s485_s12 = smov 8  }
 0x16f   :  { %397 = dma.vmem_to_hbm [thread:$0]  %s392_s3, 256, %s559_s4, [#allocation3], %s484_s11, %s484_s11, %s485_s12  }
 0x170   :  { %479 = dma.done.wait [#allocation3], 256  }
 0x171   :  { %480 = vsyncadd [#allocation3], 4294967040 }
 0x172   :  { %401 = vsyncpa [#allocation3], 1 }

</bundles_post_ra>
